<compile_context>
chip_gen: v6e
topology: v6e:2x2x1
jax: 0.10.0
libtpu: 0.0.40
codegen_flags: <defaults>
</compile_context>

<pallas_src>
import functools
import math

import jax
import jax.numpy as jnp
from jax.experimental import pallas as pl
from jax.experimental.pallas import tpu as pltpu


# ----------------------------------------------------------------------------
# Kernels. Each grid step sees a (blk_n, S, D) chunk of flattened batch*heads.
# ----------------------------------------------------------------------------
def _softmax_pv_store(scores, v, o_ref):
    """Row softmax of f32 `scores`, times `v`, stored to o_ref.

    Normalization happens after the PV matmul (fewer elements when Sk > Dv) and
    uses the EUP reciprocal instead of a VALU divide; one Newton step restores
    full f32 accuracy at negligible VPU cost.
    """
    m = jnp.max(scores, axis=-1, keepdims=True)           # stable softmax (f32)
    e = jnp.exp(scores - m)                                # unnormalized probs (f32)
    l = jnp.sum(e, axis=-1, keepdims=True)                 # (blk, Sq, 1) f32
    acc = jnp.einsum("nqk,nkd->nqd", e.astype(v.dtype), v,
                     preferred_element_type=jnp.float32)
    inv = pl.reciprocal(l, approx=True)                    # EUP slot
    inv = inv * (2.0 - l * inv)                            # 1 Newton step
    o_ref[...] = (acc * inv).astype(o_ref.dtype)


def _sdpa_kernel(q_ref, k_ref, v_ref, o_ref, *, scale):
    # Native-dtype operands into the MXU; f32 accumulation.
    scores = jnp.einsum("nqd,nkd->nqk", q_ref[...], k_ref[...],
                        preferred_element_type=jnp.float32) * scale
    _softmax_pv_store(scores, v_ref[...], o_ref)


def _sdpa_masked_kernel(q_ref, k_ref, v_ref, m_ref, o_ref, *, scale):
    scores = jnp.einsum("nqd,nkd->nqk", q_ref[...], k_ref[...],
                        preferred_element_type=jnp.float32) * scale
    # torch: scores.masked_fill(mask, 0)  (fill with 0, NOT -inf). The int8 mask
    # block may be (1, Sq, Sk) (shared) or (blk_n, Sq, Sk); jnp.where broadcasts.
    scores = jnp.where(m_ref[...] != 0, jnp.float32(0.0), scores)
    _softmax_pv_store(scores, v_ref[...], o_ref)


# ----------------------------------------------------------------------------
# Wrapper.
# ----------------------------------------------------------------------------
def _tensorcores_per_device():
    """Best-effort TensorCore count per JAX device (default 1 = no forced split)."""
    try:
        kind = jax.devices()[0].device_kind.lower()
    except Exception:
        return 1
    if "lite" in kind:                       # "TPU v5 lite" / "TPU v6 lite" (v5e/v6e)
        return 1
    for tag in ("v7", "7x", "v5p", "v4"):    # 2 TensorCores behind one device
        if tag in kind:
            return 2
    return 1


@jax.jit
def scaled_dot_product_attention(query, key, value, mask=None):
    """query: (..., Sq, D), key/value: (..., Sk, D/Dv). Returns (..., Sq, Dv)."""
    *lead, sq, d = query.shape
    sk = key.shape[-2]
    dv = value.shape[-1]
    n = int(math.prod(lead)) if lead else 1

    q3 = query.reshape(n, sq, d)
    k3 = key.reshape(n, sk, d)
    v3 = value.reshape(n, sk, dv)
    scale = 1.0 / math.sqrt(d)               # applied inside the kernel

    # ---- mask: keep it un-broadcast (int8); express sharing via the index_map.
    m3 = None
    m_shared = False
    if mask is not None:
        m = jnp.asarray(mask)
        if m.ndim < len(lead) + 2:
            m = m.reshape((1,) * (len(lead) + 2 - m.ndim) + m.shape)
        # Broadcast only the trailing (Sq, Sk) dims (cheap); leading dims stay as-is.
        m = jnp.broadcast_to(m, m.shape[:-2] + (sq, sk))
        m_n = int(math.prod(m.shape[:-2]))
        if m_n == 1:
            m3 = m.reshape(1, sq, sk).astype(jnp.int8)
            m_shared = True
        elif m_n == n:
            m3 = m.reshape(n, sq, sk).astype(jnp.int8)
        else:
            # Rare partial broadcast over leading dims: materialize, but as int8.
            m3 = jnp.broadcast_to(m, tuple(lead) + (sq, sk)).reshape(n, sq, sk)
            m3 = m3.astype(jnp.int8)

    # ---- block size: largest block within a generation-aware VMEM budget.
    cores = _tensorcores_per_device()
    isz = query.dtype.itemsize
    mask_row_bytes = (sq * sk) if (m3 is not None and not m_shared) else 0
    bytes_per_n = (
        2 * isz * (sq * d + sk * d + sk * dv + sq * dv)   # double-buffered q/k/v/o blocks
        + 2 * mask_row_bytes                              # double-buffered int8 mask block
        + 4 * (2 * sq * sk + sq * dv + 2 * sq))           # f32 scores/e, f32 acc, m/l
    budget = (8 << 20) if cores > 1 else (16 << 20)       # 2-TC chips have half the VMEM
    blk_n = max(1, min(n, budget // max(bytes_per_n, 1)))
    if cores > 1 and n > 1:
        # Keep >= `cores` grid steps only when there are multiple TensorCores.
        blk_n = min(blk_n, max(1, -(-n // cores)))
    steps = -(-n // blk_n)                                 # cdiv
    n_pad = steps * blk_n

    if n_pad != n:                                         # pad instead of blk_n | n
        pad = [(0, n_pad - n), (0, 0), (0, 0)]
        q3, k3, v3 = jnp.pad(q3, pad), jnp.pad(k3, pad), jnp.pad(v3, pad)
        if m3 is not None and not m_shared:
            m3 = jnp.pad(m3, pad)

    q_spec = pl.BlockSpec((blk_n, sq, d), lambda i: (i, 0, 0))
    k_spec = pl.BlockSpec((blk_n, sk, d), lambda i: (i, 0, 0))
    v_spec = pl.BlockSpec((blk_n, sk, dv), lambda i: (i, 0, 0))
    o_spec = pl.BlockSpec((blk_n, sq, dv), lambda i: (i, 0, 0))
    out_shape = jax.ShapeDtypeStruct((n_pad, sq, dv), query.dtype)

    needed_bytes = bytes_per_n * blk_n
    cparams = pltpu.CompilerParams(
        dimension_semantics=("parallel",),
        vmem_limit_bytes=int(max(needed_bytes + (2 << 20), 16 << 20)),
    )

    if mask is None:
        out = pl.pallas_call(
            functools.partial(_sdpa_kernel, scale=scale),
            out_shape=out_shape,
            grid=(steps,),
            in_specs=[q_spec, k_spec, v_spec],
            out_specs=o_spec,
            compiler_params=cparams,
        )(q3, k3, v3)
    else:
        if m_shared:
            m_spec = pl.BlockSpec((1, sq, sk), lambda i: (0, 0, 0))
        else:
            m_spec = pl.BlockSpec((blk_n, sq, sk), lambda i: (i, 0, 0))
        out = pl.pallas_call(
            functools.partial(_sdpa_masked_kernel, scale=scale),
            out_shape=out_shape,
            grid=(steps,),
            in_specs=[q_spec, k_spec, v_spec, m_spec],
            out_specs=o_spec,
            compiler_params=cparams,
        )(q3, k3, v3, m3)

    # TODO(synk): p_attn dropout (only applied when a Dropout module is passed to
    # forward; default is None) is not implemented -- would use pltpu.prng_seed +
    # pltpu.stateful_bernoulli inside the kernel for training mode.
    return out[:n].reshape(*lead, sq, dv)


# ----------------------------------------------------------------------------
# Pure-JAX reference (mirrors the PyTorch forward) for verification.
# ----------------------------------------------------------------------------
def sdpa_reference(q, k, v, mask=None):
    d_k = k.shape[-1]
    scores = jnp.einsum("...qd,...kd->...qk", q.astype(jnp.float32),
                        k.astype(jnp.float32)) / jnp.sqrt(jnp.float32(d_k))
    if mask is not None:
        scores = jnp.where(mask, 0.0, scores)
    p = jax.nn.softmax(scores, axis=-1)
    return jnp.einsum("...qk,...kd->...qd", p, v.astype(jnp.float32))


if __name__ == "__main__":
    # small shapes consistent with the module: batch=2, heads=4, seq=8, d_k=32
    B, H, S, D = 2, 4, 8, 32

    root = jax.random.PRNGKey(0)
    kq, kk, kv, km = jax.random.split(root, 4)
    q = jax.random.normal(kq, (B, H, S, D), dtype=jnp.float32)
    k = jax.random.normal(kk, (B, H, S, D), dtype=jnp.float32)
    v = jax.random.normal(kv, (B, H, S, D), dtype=jnp.float32)

    # default forward path (mask=None, dropout=None)
    out = jax.block_until_ready(scaled_dot_product_attention(q, k, v))
    assert out.shape == (B, H, S, D)
    ref = sdpa_reference(q, k, v)
    assert jnp.allclose(out, ref, atol=2e-4, rtol=2e-4), \
        float(jnp.max(jnp.abs(out - ref)))

    # masked path, full (B,H,S,S) mask (torch masked_fill(mask, 0) semantics)
    mask_full = jax.random.bernoulli(km, 0.25, (B, H, S, S))
    out_m = jax.block_until_ready(
        scaled_dot_product_attention(q, k, v, mask=mask_full))
    ref_m = sdpa_reference(q, k, v, mask=mask_full)
    assert jnp.allclose(out_m, ref_m, atol=2e-4, rtol=2e-4)

    # masked path, shared (S,S) mask -> no broadcast materialization (index_map)
    mask_shared = mask_full[0, 0]
    out_s = jax.block_until_ready(
        scaled_dot_product_attention(q, k, v, mask=mask_shared))
    ref_s = sdpa_reference(q, k, v, mask=mask_shared)
    assert jnp.allclose(out_s, ref_s, atol=2e-4, rtol=2e-4)

    # native low-precision path: bf16 operands fed straight to the MXU
    qb, kb, vb = (x.astype(jnp.bfloat16) for x in (q, k, v))
    out_b = jax.block_until_ready(scaled_dot_product_attention(qb, kb, vb))
    ref_b = sdpa_reference(qb, kb, vb)
    assert jnp.allclose(out_b.astype(jnp.float32), ref_b, atol=3e-2, rtol=3e-2)

    print("KERNEL_OK")
</pallas_src>

<mosaic_0001>
module attributes {stable_mosaic.version = 11 : i64} {
  func.func @_sdpa_kernel(%arg0: i32, %arg1: memref<8x8x32xf32, #tpu.memory_space<vmem>>, %arg2: memref<8x8x32xf32, #tpu.memory_space<vmem>>, %arg3: memref<8x8x32xf32, #tpu.memory_space<vmem>>, %arg4: memref<8x8x32xf32, #tpu.memory_space<vmem>>) attributes {dimension_semantics = [#tpu.dimension_semantics<parallel>], iteration_bounds = array<i64: 1>, scalar_prefetch = 0 : i64, scratch_operands = 0 : i64, tpu.core_type = #tpu.core_type<tc>, window_params = [{transform_indices = @transform_0, window_bounds = array<i64: 8, 8, 32>}, {transform_indices = @transform_1, window_bounds = array<i64: 8, 8, 32>}, {transform_indices = @transform_2, window_bounds = array<i64: 8, 8, 32>}, {transform_indices = @transform_3, window_bounds = array<i64: 8, 8, 32>}]} {
    %c0 = arith.constant 0 : index
    %c0_0 = arith.constant 0 : index
    %c0_1 = arith.constant 0 : index
    %0 = vector.load %arg1[%c0, %c0_0, %c0_1] : memref<8x8x32xf32, #tpu.memory_space<vmem>>, vector<8x8x32xf32>
    %c0_2 = arith.constant 0 : index
    %c0_3 = arith.constant 0 : index
    %c0_4 = arith.constant 0 : index
    %1 = vector.load %arg2[%c0_2, %c0_3, %c0_4] : memref<8x8x32xf32, #tpu.memory_space<vmem>>, vector<8x8x32xf32>
    "tpu.trace_start"() <{level = 10 : i32, message = "nqd,nkd->nqk"}> : () -> ()
    %cst = arith.constant dense<0.000000e+00> : vector<8x8x8xf32>
    %2 = tpu.matmul %0, %1, %cst {dimension_numbers = #tpu.dot_dimension_numbers<[2], [2], [1], [1], [0, 0, 0, 1, 1, 1], [0], [0]>} : vector<8x8x32xf32>, vector<8x8x32xf32>, vector<8x8x8xf32> -> vector<8x8x8xf32>
    "tpu.trace_stop"() : () -> ()
    %cst_5 = arith.constant 0.176776692 : f32
    %3 = vector.broadcast %cst_5 : f32 to vector<8x8x8xf32>
    %4 = arith.mulf %2, %3 : vector<8x8x8xf32>
    %c0_6 = arith.constant 0 : index
    %c0_7 = arith.constant 0 : index
    %c0_8 = arith.constant 0 : index
    %5 = vector.load %arg3[%c0_6, %c0_7, %c0_8] : memref<8x8x32xf32, #tpu.memory_space<vmem>>, vector<8x8x32xf32>
    %cst_9 = arith.constant dense<0xFF800000> : vector<8x8xf32>
    %6 = vector.multi_reduction <maximumf>, %4, %cst_9 [2] : vector<8x8x8xf32> to vector<8x8xf32>
    %7 = vector.shape_cast %6 : vector<8x8xf32> to vector<8x8x1xf32>
    %8 = vector.broadcast %7 : vector<8x8x1xf32> to vector<8x8x8xf32>
    %9 = arith.subf %4, %8 : vector<8x8x8xf32>
    %10 = math.exp %9 : vector<8x8x8xf32>
    %cst_10 = arith.constant dense<0.000000e+00> : vector<8x8xf32>
    %11 = vector.multi_reduction <add>, %10, %cst_10 [2] : vector<8x8x8xf32> to vector<8x8xf32>
    %12 = vector.shape_cast %11 : vector<8x8xf32> to vector<8x8x1xf32>
    "tpu.trace_start"() <{level = 10 : i32, message = "nqk,nkd->nqd"}> : () -> ()
    %cst_11 = arith.constant dense<0.000000e+00> : vector<8x8x32xf32>
    %13 = tpu.matmul %10, %5, %cst_11 {dimension_numbers = #tpu.dot_dimension_numbers<[2], [1], [1], [2], [0, 0, 0, 1, 1, 2], [0], [0]>} : vector<8x8x8xf32>, vector<8x8x32xf32>, vector<8x8x32xf32> -> vector<8x8x32xf32>
    "tpu.trace_stop"() : () -> ()
    %14 = tpu.reciprocal %12 {approx = true} : vector<8x8x1xf32> -> vector<8x8x1xf32>
    %15 = arith.mulf %12, %14 : vector<8x8x1xf32>
    %cst_12 = arith.constant 2.000000e+00 : f32
    %16 = vector.broadcast %cst_12 : f32 to vector<8x8x1xf32>
    %17 = arith.subf %16, %15 : vector<8x8x1xf32>
    %18 = arith.mulf %14, %17 : vector<8x8x1xf32>
    %19 = vector.broadcast %18 : vector<8x8x1xf32> to vector<8x8x32xf32>
    %20 = arith.mulf %13, %19 : vector<8x8x32xf32>
    %c0_13 = arith.constant 0 : index
    %c0_14 = arith.constant 0 : index
    %c0_15 = arith.constant 0 : index
    %21 = vector.load %arg4[%c0_13, %c0_14, %c0_15] : memref<8x8x32xf32, #tpu.memory_space<vmem>>, vector<8x8x32xf32>
    tpu.vector_store %arg4[%c0_13, %c0_14, %c0_15], %20 {strides = array<i32>} : memref<8x8x32xf32, #tpu.memory_space<vmem>>, vector<8x8x32xf32>,
    return
  }
  func.func @transform_0(%arg0: i32) -> (i32, i32, i32) {
    %c0_i32 = arith.constant 0 : i32
    %c0_i32_0 = arith.constant 0 : i32
    %c0_i32_1 = arith.constant 0 : i32
    return %arg0, %c0_i32, %c0_i32_0 : i32, i32, i32
  }
  func.func @transform_1(%arg0: i32) -> (i32, i32, i32) {
    %c0_i32 = arith.constant 0 : i32
    %c0_i32_0 = arith.constant 0 : i32
    %c0_i32_1 = arith.constant 0 : i32
    return %arg0, %c0_i32, %c0_i32_0 : i32, i32, i32
  }
  func.func @transform_2(%arg0: i32) -> (i32, i32, i32) {
    %c0_i32 = arith.constant 0 : i32
    %c0_i32_0 = arith.constant 0 : i32
    %c0_i32_1 = arith.constant 0 : i32
    return %arg0, %c0_i32, %c0_i32_0 : i32, i32, i32
  }
  func.func @transform_3(%arg0: i32) -> (i32, i32, i32) {
    %c0_i32 = arith.constant 0 : i32
    %c0_i32_0 = arith.constant 0 : i32
    %c0_i32_1 = arith.constant 0 : i32
    return %arg0, %c0_i32, %c0_i32_0 : i32, i32, i32
  }
}

</mosaic_0001>

<bundles_post_ra>
// kernel: scaled_dot_product_attention.1
= control target key start
LH: loop header
LB: loop body
LE: loop exit
PB: predicated region body
PF: predicated region fallthrough
CT: control target
= control target key end

     0   :  { %8 = vsyncpa [#allocation3], 0  ;;  %s1830_s0 = inlined_call_operand.hbm [shape: f32[8,8,32], index: 0, kind: input, shape index: {}]   ;;  %s1831_s1 = inlined_call_operand.hbm [shape: f32[8,8,32], index: 1, kind: input, shape index: {}]   ;;  %s1832_s2 = inlined_call_operand.hbm [shape: f32[8,8,32], index: 2, kind: input, shape index: {}]   ;;  %s1833_s3 = inlined_call_operand.hbm [shape: f32[8,8,32], index: 3, kind: output, shape index: {}]  }
   0x1   :  { %9 = vsyncpa [#allocation6], 0 }
   0x2   :  { %10 = vsyncpa [#allocation4], 0  ;;  %s1682_s12 = smov [#allocation5]   ;;  %s1683_s14 = smov [#allocation2]  }
   0x3   :  { %s28_s13 = sshll.u32 %s1682_s12, 4  ;;  %s16_s15 = sshll.u32 %s1683_s14, 4  ;;  %s29_s13 = int_to_ptr.vmem [resolvable:$true] %s28_s13  ;;  %s17_s15 = int_to_ptr.vmem [resolvable:$true] %s16_s15 }
   0x4   :  { %s1604_s16 = scalar_lea.vmem %s29_s13, 1024  ;;  %p1609_p1 = scmp.lt.s32.totalorder %s29_s13, %s29_s13 }
   0x5   :  { %p1605_p0 = scmp.ne.s32.totalorder %s29_s13, %s1604_s16  ;;  %p1610_p2 = scmp.lt.s32.totalorder %s1604_s16, %s1604_s16 }
   0x7   :  { %p1611_p3 = por %p1610_p2, %p1609_p1 }
   0x9   :  { %p1612_p4 = pnand %p1611_p3, %p1605_p0 }
   0xb   :  { %1615 = shalt.err (!%p1612_p4)
}
   0xc   :  { %s1684_s17 = smov 128   ;;  %s1685_s18 = smov 8  }
   0xd   :  { %34 = dma.hbm_to_vmem [thread:$0]  %s1831_s1, 1024, %s29_s13, [#allocation6], %s1684_s17, %s1684_s17, %s1685_s18  }
   0xe   :  { %s1624_s21 = scalar_lea.vmem %s17_s15, 1024  ;;  %p1629_p6 = scmp.lt.s32.totalorder %s17_s15, %s17_s15 }
   0xf   :  { %p1625_p5 = scmp.ne.s32.totalorder %s17_s15, %s1624_s21  ;;  %p1630_p7 = scmp.lt.s32.totalorder %s1624_s21, %s1624_s21 }
  0x11   :  { %p1631_p8 = por %p1630_p7, %p1629_p6 }
  0x13   :  { %p1632_p9 = pnand %p1631_p8, %p1625_p5 }
  0x15   :  { %1635 = shalt.err (!%p1632_p9)
}
  0x16   :  { %22 = dma.hbm_to_vmem [thread:$0]  %s1830_s0, 1024, %s17_s15, [#allocation3], %s1684_s17, %s1684_s17, %s1685_s18  }
  0x17   :  { %s1686_s24 = smov [#allocation7]  }
  0x18   :  { %s40_s25 = sshll.u32 %s1686_s24, 4  ;;  %s41_s25 = int_to_ptr.vmem [resolvable:$true] %s40_s25 }
  0x19   :  { %s1644_s26 = scalar_lea.vmem %s41_s25, 1024  ;;  %p1649_p11 = scmp.lt.s32.totalorder %s41_s25, %s41_s25 }
  0x1a   :  { %p1645_p10 = scmp.ne.s32.totalorder %s41_s25, %s1644_s26  ;;  %p1650_p12 = scmp.lt.s32.totalorder %s1644_s26, %s1644_s26 }
  0x1c   :  { %p1651_p13 = por %p1650_p12, %p1649_p11 }
  0x1e   :  { %p1652_p0 = pnand %p1651_p13, %p1645_p10 }
  0x20   :  { %1655 = shalt.err (!%p1652_p0)
}
  0x21   :  { %46 = dma.hbm_to_vmem [thread:$0]  %s1832_s2, 1024, %s41_s25, [#allocation6], %s1684_s17, %s1684_s17, %s1685_s18  }
  0x22   :  { %1676 = dma.done.wait [#allocation3], 1024  }
  0x23   :  { %1677 = vsyncadd [#allocation3], 4294966272 }
  0x24   :  { %1678 = dma.done.wait [#allocation6], 2048  }
  0x25   :  { %1679 = vsyncadd [#allocation6], 4294965248  ;;  %v1687_v0 = vmov 0.0   ;;  %vm1688_vm0 = vmmov 0   ;;  %vm72_vm1 = vcmask 261120   ;;  %v64_v1 = vld [vmem:[#allocation5] sm:$0xff] }
  0x26   :  { %1476 = vmatprep.subr.mxu0 %v1687_v0  ;;  %1478 = vmatprep.mubr.msk.f32.mxu0 %vm1688_vm0, %v1687_v0  ;;  %v65_v2 = vld [vmem:[#allocation5 + $0x8] sm:$0xff]  ;;  %v56_v3 = vld [vmem:[#allocation2] sm:$0xff]  ;;  %v66_v5 = vld [vmem:[#allocation5 + $0x10] sm:$0xff]  ;;  %vm697_vm2 = vcmask 64512   ;;  %s1689_s0 = smov [#allocation8]  }
  0x27   :  { %1481 = vmatprep.subr.mxu1 %v1687_v0  ;;  %1483 = vmatprep.mubr.msk.f32.mxu1 %vm1688_vm0, %v1687_v0  ;;  %v57_v4 = vld [vmem:[#allocation2 + $0x8] sm:$0xff]  ;;  %v67_v6 = vld [vmem:[#allocation5 + $0x18] sm:$0xff]  ;;  %v58_v7 = vld [vmem:[#allocation2 + $0x10] sm:$0xff]  ;;  %s1407_s2 = sshll.u32 %s1689_s0, 4  ;;  %s1408_s2 = int_to_ptr.vmem [resolvable:$true] %s1407_s2 }
  0x28   :  { %1477 = vmatpush3.xpose.msk.msra.mxu0 %vm72_vm1, %v64_v1  ;;  %1482 = vmatpush3.xpose.msk.msra.mxu1 %vm72_vm1, %v65_v2  ;;  %v68_v8 = vld [vmem:[#allocation5 + $0x20] sm:$0xff]  ;;  %v59_v9 = vld [vmem:[#allocation2 + $0x18] sm:$0xff]  ;;  %v69_v10 = vld [vmem:[#allocation5 + $0x28] sm:$0xff]  ;;  %s1656_s28 = scalar_lea.vmem %s1408_s2, 1024  ;;  %p1661_p2 = scmp.lt.s32.totalorder %s1408_s2, %s1408_s2 }
  0x29   :  { %1486 = vmatprep.subr.mxu0 %v1687_v0  ;;  %1491 = vmatprep.subr.mxu1 %v1687_v0  ;;  %v60_v11 = vld [vmem:[#allocation2 + $0x20] sm:$0xff]  ;;  %v70_v12 = vld [vmem:[#allocation5 + $0x30] sm:$0xff]  ;;  %v61_v13 = vld [vmem:[#allocation2 + $0x28] sm:$0xff]  ;;  %p1657_p1 = scmp.ne.s32.totalorder %s1408_s2, %s1656_s28  ;;  %p1662_p3 = scmp.lt.s32.totalorder %s1656_s28, %s1656_s28 }
  0x2a   :  { %v71_v14 = vld [vmem:[#allocation5 + $0x38] sm:$0xff]  ;;  %v62_v15 = vld [vmem:[#allocation2 + $0x30] sm:$0xff]  ;;  %v689_v49 = vld [vmem:[#allocation7] sm:$0xff] }
  0x2b   :  { %1479 = vmatmul.mubr.msk.f32.vlgmr.msra.gmra.mxu0 %vm72_vm1, %v56_v3  ;;  %1484 = vmatmul.mubr.msk.f32.vlgmr.msra.gmra.mxu1 %vm72_vm1, %v57_v4  ;;  %v63_v16 = vld [vmem:[#allocation2 + $0x38] sm:$0xff]  ;;  %v690_v50 = vld [vmem:[#allocation7 + $0x8] sm:$0xff]  ;;  %p1663_p4 = por %p1662_p3, %p1661_p2 }
  0x2c   :  { %1487 = vmatpush3.xpose.msk.msra.mxu0 %vm72_vm1, %v66_v5  ;;  %1488 = vmatprep.mubr.msk.f32.mxu0 %vm1688_vm0, %v1687_v0 }
  0x2d   :  { %1492 = vmatpush3.xpose.msk.msra.mxu1 %vm72_vm1, %v67_v6  ;;  %1496 = vmatprep.subr.mxu0 %v1687_v0  ;;  %p1664_p5 = pnand %p1663_p4, %p1657_p1 }
  0x2e   :  { %1493 = vmatprep.mubr.msk.f32.mxu1 %vm1688_vm0, %v1687_v0  ;;  %1501 = vmatprep.subr.mxu1 %v1687_v0 }
  0x2f   :  { %1489 = vmatmul.mubr.msk.f32.vlgmr.msra.gmra.mxu0 %vm72_vm1, %v58_v7 }
  0x30   :  { %1497 = vmatpush3.xpose.msk.msra.mxu0 %vm72_vm1, %v68_v8  ;;  %1494 = vmatmul.mubr.msk.f32.vlgmr.msra.gmra.mxu1 %vm72_vm1, %v59_v9 }
  0x31   :  { %1498 = vmatprep.mubr.msk.f32.mxu0 %vm1688_vm0, %v1687_v0  ;;  %1502 = vmatpush3.xpose.msk.msra.mxu1 %vm72_vm1, %v69_v10 }
  0x32   :  { %1506 = vmatprep.subr.mxu0 %v1687_v0  ;;  %1503 = vmatprep.mubr.msk.f32.mxu1 %vm1688_vm0, %v1687_v0 }
  0x33   :  { %1499 = vmatmul.mubr.msk.f32.vlgmr.msra.gmra.mxu0 %vm72_vm1, %v60_v11  ;;  %1511 = vmatprep.subr.mxu1 %v1687_v0  ;;  %v691_v11 = vld [vmem:[#allocation7 + $0x10] sm:$0xff] }
  0x34   :  { %1507 = vmatpush3.xpose.msk.msra.mxu0 %vm72_vm1, %v70_v12  ;;  %1504 = vmatmul.mubr.msk.f32.vlgmr.msra.gmra.mxu1 %vm72_vm1, %v61_v13 }
  0x35   :  { %1508 = vmatprep.mubr.msk.f32.mxu0 %vm1688_vm0, %v1687_v0  ;;  %1512 = vmatpush3.xpose.msk.msra.mxu1 %vm72_vm1, %v71_v14 }
  0x36   :  { %1513 = vmatprep.mubr.msk.f32.mxu1 %vm1688_vm0, %v1687_v0  ;;  %1516 = vmatprep.subr.mxu0 %v1687_v0 }
  0x37   :  { %1509 = vmatmul.mubr.msk.f32.vlgmr.msra.gmra.mxu0 %vm72_vm1, %v62_v15  ;;  %1521 = vmatprep.subr.mxu1 %v1687_v0  ;;  %v692_v15 = vld [vmem:[#allocation7 + $0x18] sm:$0xff] }
  0x38   :  { %1514 = vmatmul.mubr.msk.f32.vlgmr.msra.gmra.mxu1 %vm72_vm1, %v63_v16  ;;  %1518 = vmatprep.mubr.msk.f32.mxu0 %vm1688_vm0, %v1687_v0 }
  0x39   :  { %1523 = vmatprep.mubr.msk.f32.mxu1 %vm1688_vm0, %v1687_v0  ;;  %1517 = vmatpush3.msra.mxu0 %v689_v49 }
  0x3a   :  { %1526 = vmatprep.subr.mxu0 %v1687_v0  ;;  %1522 = vmatpush3.msra.mxu1 %v690_v50 }
  0x3b   :  { %1531 = vmatprep.subr.mxu1 %v1687_v0 }
  0xeb   :  { %v145_v17 = vpop.f32.mrf.mxu0  ;;  %v221_v18 = vpop.f32.mrf.mxu1 }
  0xec   :  { %v681_v19 = vmul.f32 0.17677669, %v145_v17  ;;  %v682_v20 = vmul.f32 0.17677669, %v221_v18 }
  0xed   :  { %v1480_v21 = vpop.f32.mrf.mxu0  ;;  %v1485_v22 = vpop.f32.mrf.mxu1 }
  0xee   :  { %v698_v23 = vsel %vm697_vm2, %v681_v19, -inf  ;;  %v701_v27 = vsel %vm697_vm2, %v682_v20, -inf  ;;  %v694_v22 = vld [vmem:[#allocation7 + $0x28] sm:$0xff] }
  0xef   :  { %699 = vmax.xlane.f32.xlu0 %v698_v23  ;;  %v297_v24 = vpop.f32.mrf.mxu0 }
  0xf0   :  { %v683_v25 = vmul.f32 0.17677669, %v297_v24  ;;  %v373_v26 = vpop.f32.mrf.mxu1 }
  0xf1   :  { %v1490_v28 = vpop.f32.mrf.mxu0  ;;  %v684_v29 = vmul.f32 0.17677669, %v373_v26  ;;  %v695_v26 = vld [vmem:[#allocation7 + $0x30] sm:$0xff] }
  0xf2   :  { %v704_v30 = vsel %vm697_vm2, %v683_v25, -inf  ;;  %v1495_v31 = vpop.f32.mrf.mxu1 }
  0xf3   :  { %702 = vmax.xlane.f32.xlu0 %v701_v27  ;;  %705 = vmax.xlane.f32.xlu1 %v704_v30  ;;  %v449_v32 = vpop.f32.mrf.mxu0  ;;  %v707_v35 = vsel %vm697_vm2, %v684_v29, -inf }
  0xf4   :  { %v685_v33 = vmul.f32 0.17677669, %v449_v32  ;;  %v525_v34 = vpop.f32.mrf.mxu1 }
  0xf5   :  { %v1500_v36 = vpop.f32.mrf.mxu0  ;;  %v686_v37 = vmul.f32 0.17677669, %v525_v34 }
  0xf6   :  { %v710_v38 = vsel %vm697_vm2, %v685_v33, -inf  ;;  %v1505_v39 = vpop.f32.mrf.mxu1 }
  0xf7   :  { %708 = vmax.xlane.f32.xlu1 %v707_v35  ;;  %711 = vmax.xlane.f32.xlu0 %v710_v38  ;;  %v601_v40 = vpop.f32.mrf.mxu0  ;;  %v713_v43 = vsel %vm697_vm2, %v686_v37, -inf }
  0xf8   :  { %v687_v41 = vmul.f32 0.17677669, %v601_v40  ;;  %v677_v42 = vpop.f32.mrf.mxu1 }
  0xf9   :  { %v688_v44 = vmul.f32 0.17677669, %v677_v42  ;;  %v1510_v45 = vpop.f32.mrf.mxu0 }
  0xfa   :  { %v716_v46 = vsel %vm697_vm2, %v687_v41, -inf  ;;  %v1515_v47 = vpop.f32.mrf.mxu1 }
  0xfb   :  { %714 = vmax.xlane.f32.xlu1 %v713_v43  ;;  %717 = vmax.xlane.f32.xlu0 %v716_v46  ;;  %v719_v48 = vsel %vm697_vm2, %v688_v44, -inf }
  0xff   :  { %720 = vmax.xlane.f32.xlu1 %v719_v48 }
 0x178   :  { %v700_v51 = vpop.xlane.xlu0 %699 }
 0x179   :  { %v722_v52 = vsub.f32 %v681_v19, %v700_v51  ;;  %v693_v19 = vld [vmem:[#allocation7 + $0x20] sm:$0xff] }
 0x17b   :  { %v730_v53 = vmul.f32 1.442695, %v722_v52 }
 0x17c   :  { %v703_v54 = vpop.xlane.xlu0 %702  ;;  %v706_v55 = vpop.xlane.xlu1 %705 }
 0x17d   :  { %1564 = vpow2.f32 %v730_v53  ;;  %v723_v56 = vsub.f32 %v682_v20, %v703_v54  ;;  %v724_v57 = vsub.f32 %v683_v25, %v706_v55 }
 0x17f   :  { %v732_v58 = vmul.f32 1.442695, %v723_v56  ;;  %v734_v59 = vmul.f32 1.442695, %v724_v57 }
 0x180   :  { %v709_v60 = vpop.xlane.xlu1 %708  ;;  %v712_v61 = vpop.xlane.xlu0 %711 }
 0x181   :  { %1566 = vpow2.f32 %v732_v58  ;;  %v725_v62 = vsub.f32 %v684_v29, %v709_v60  ;;  %v726_v63 = vsub.f32 %v685_v33, %v712_v61  ;;  %v696_v29 = vld [vmem:[#allocation7 + $0x38] sm:$0xff] }
 0x182   :  { %1568 = vpow2.f32 %v734_v59 }
 0x183   :  { %v736_v1 = vmul.f32 1.442695, %v725_v62  ;;  %v738_v2 = vmul.f32 1.442695, %v726_v63 }
 0x184   :  { %v715_v3 = vpop.xlane.xlu1 %714  ;;  %v718_v4 = vpop.xlane.xlu0 %717 }
 0x185   :  { %1570 = vpow2.f32 %v736_v1  ;;  %v727_v5 = vsub.f32 %v686_v37, %v715_v3  ;;  %v728_v6 = vsub.f32 %v687_v41, %v718_v4 }
 0x186   :  { %1572 = vpow2.f32 %v738_v2 }
 0x187   :  { %v740_v7 = vmul.f32 1.442695, %v727_v5  ;;  %v742_v8 = vmul.f32 1.442695, %v728_v6 }
 0x188   :  { %v721_v9 = vpop.xlane.xlu1 %720 }
 0x189   :  { %1574 = vpow2.f32 %v740_v7  ;;  %v729_v10 = vsub.f32 %v688_v44, %v721_v9 }
 0x18a   :  { %v1565_v12 = vpop.eup %1564  ;;  %1576 = vpow2.f32 %v742_v8 }
 0x18b   :  { %v744_v13 = vmul.f32 1.442695, %v729_v10  ;;  %1519 = vmatmul.mubr.msk.f32.vlgmr.msra.gmra.mxu0 %vm697_vm2, %v1565_v12  ;;  %v746_v14 = vsel %vm697_vm2, %v1565_v12, 0.0 }
 0x18c   :  { %747 = vadd.xlane.f32.xlu0 %v746_v14  ;;  %1527 = vmatpush3.msra.mxu0 %v691_v11 }
 0x18d   :  { %1578 = vpow2.f32 %v744_v13  ;;  %1528 = vmatprep.mubr.msk.f32.mxu0 %vm1688_vm0, %v1687_v0  ;;  %1536 = vmatprep.subr.mxu0 %v1687_v0 }
 0x18e   :  { %v1567_v16 = vpop.eup %1566 }
 0x18f   :  { %v1569_v17 = vpop.eup %1568  ;;  %1524 = vmatmul.mubr.msk.f32.vlgmr.msra.gmra.mxu1 %vm697_vm2, %v1567_v16  ;;  %v749_v18 = vsel %vm697_vm2, %v1567_v16, 0.0 }
 0x190   :  { %1529 = vmatmul.mubr.msk.f32.vlgmr.msra.gmra.mxu0 %vm697_vm2, %v1569_v17  ;;  %1532 = vmatpush3.msra.mxu1 %v692_v15  ;;  %v752_v20 = vsel %vm697_vm2, %v1569_v17, 0.0 }
 0x191   :  { %750 = vadd.xlane.f32.xlu1 %v749_v18  ;;  %753 = vadd.xlane.f32.xlu0 %v752_v20 }
 0x192   :  { %v1571_v21 = vpop.eup %1570  ;;  %1533 = vmatprep.mubr.msk.f32.mxu1 %vm1688_vm0, %v1687_v0  ;;  %1537 = vmatpush3.msra.mxu0 %v693_v19 }
 0x193   :  { %v1573_v23 = vpop.eup %1572  ;;  %1538 = vmatprep.mubr.msk.f32.mxu0 %vm1688_vm0, %v1687_v0  ;;  %1534 = vmatmul.mubr.msk.f32.vlgmr.msra.gmra.mxu1 %vm697_vm2, %v1571_v21  ;;  %v755_v24 = vsel %vm697_vm2, %v1571_v21, 0.0 }
 0x194   :  { %1539 = vmatmul.mubr.msk.f32.vlgmr.msra.gmra.mxu0 %vm697_vm2, %v1573_v23  ;;  %1541 = vmatprep.subr.mxu1 %v1687_v0  ;;  %v758_v25 = vsel %vm697_vm2, %v1573_v23, 0.0 }
 0x195   :  { %1542 = vmatpush3.msra.mxu1 %v694_v22  ;;  %756 = vadd.xlane.f32.xlu1 %v755_v24 }
 0x196   :  { %v1575_v27 = vpop.eup %1574  ;;  %759 = vadd.xlane.f32.xlu0 %v758_v25  ;;  %1546 = vmatprep.subr.mxu0 %v1687_v0 }
 0x197   :  { %v1577_v28 = vpop.eup %1576  ;;  %1543 = vmatprep.mubr.msk.f32.mxu1 %vm1688_vm0, %v1687_v0  ;;  %1547 = vmatpush3.msra.mxu0 %v695_v26  ;;  %v761_v30 = vsel %vm697_vm2, %v1575_v27, 0.0 }
 0x198   :  { %1548 = vmatprep.mubr.msk.f32.mxu0 %vm1688_vm0, %v1687_v0  ;;  %1544 = vmatmul.mubr.msk.f32.vlgmr.msra.gmra.mxu1 %vm697_vm2, %v1575_v27  ;;  %v764_v31 = vsel %vm697_vm2, %v1577_v28, 0.0 }
 0x199   :  { %1549 = vmatmul.mubr.msk.f32.vlgmr.msra.gmra.mxu0 %vm697_vm2, %v1577_v28  ;;  %1551 = vmatprep.subr.mxu1 %v1687_v0 }
 0x19a   :  { %v1579_v32 = vpop.eup %1578  ;;  %1552 = vmatpush3.msra.mxu1 %v696_v29  ;;  %762 = vadd.xlane.f32.xlu1 %v761_v30 }
 0x19b   :  { %765 = vadd.xlane.f32.xlu0 %v764_v31  ;;  %1553 = vmatprep.mubr.msk.f32.mxu1 %vm1688_vm0, %v1687_v0  ;;  %v767_v33 = vsel %vm697_vm2, %v1579_v32, 0.0 }
 0x19c   :  { %1554 = vmatmul.mubr.msk.f32.vlgmr.msra.gmra.mxu1 %vm697_vm2, %v1579_v32 }
 0x19e   :  { %768 = vadd.xlane.f32.xlu1 %v767_v33 }
 0x215   :  { %v748_v34 = vpop.xlane.xlu0 %747 }
 0x216   :  { %1580 = vrcp.f32 %v748_v34 }
 0x21a   :  { %v751_v35 = vpop.xlane.xlu1 %750  ;;  %v754_v36 = vpop.xlane.xlu0 %753 }
 0x21b   :  { %1582 = vrcp.f32 %v751_v35 }
 0x21c   :  { %1584 = vrcp.f32 %v754_v36 }
 0x21e   :  { %v757_v37 = vpop.xlane.xlu1 %756 }
 0x21f   :  { %v760_v38 = vpop.xlane.xlu0 %759  ;;  %1586 = vrcp.f32 %v757_v37 }
 0x220   :  { %1588 = vrcp.f32 %v760_v38 }
 0x223   :  { %v763_v39 = vpop.xlane.xlu1 %762  ;;  %v1581_v41 = vpop.eup %1580 }
 0x224   :  { %v766_v40 = vpop.xlane.xlu0 %765  ;;  %1590 = vrcp.f32 %v763_v39  ;;  %v1362_v42 = vmul.f32 %v1581_v41, %v748_v34 }
 0x225   :  { %1592 = vrcp.f32 %v766_v40 }
 0x226   :  { %v1370_v45 = vsub.f32 2.0, %v1362_v42 }
 0x227   :  { %v769_v0 = vpop.xlane.xlu1 %768 }
 0x228   :  { %v1583_v43 = vpop.eup %1582  ;;  %1594 = vrcp.f32 %v769_v0  ;;  %v1378_v52 = vmul.f32 %v1581_v41, %v1370_v45 }
 0x229   :  { %v1585_v44 = vpop.eup %1584  ;;  %v1363_v46 = vmul.f32 %v1583_v43, %v751_v35 }
 0x22a   :  { %v1364_v48 = vmul.f32 %v1585_v44, %v754_v36 }
 0x22b   :  { %v1371_v50 = vsub.f32 2.0, %v1363_v46 }
 0x22c   :  { %v1587_v47 = vpop.eup %1586  ;;  %v1372_v53 = vsub.f32 2.0, %v1364_v48 }
 0x22d   :  { %v1589_v49 = vpop.eup %1588  ;;  %v1365_v51 = vmul.f32 %v1587_v47, %v757_v37  ;;  %v1379_v61 = vmul.f32 %v1583_v43, %v1371_v50 }
 0x22e   :  { %v1366_v54 = vmul.f32 %v1589_v49, %v760_v38  ;;  %v1380_v2 = vmul.f32 %v1585_v44, %v1372_v53 }
 0x22f   :  { %v1373_v60 = vsub.f32 2.0, %v1365_v51 }
 0x230   :  { %v1374_v62 = vsub.f32 2.0, %v1366_v54 }
 0x231   :  { %v1591_v56 = vpop.eup %1590  ;;  %v1381_v10 = vmul.f32 %v1587_v47, %v1373_v60 }
 0x232   :  { %v1593_v58 = vpop.eup %1592  ;;  %v1367_v63 = vmul.f32 %v1591_v56, %v763_v39  ;;  %v1382_v14 = vmul.f32 %v1589_v49, %v1374_v62 }
 0x233   :  { %v1368_v4 = vmul.f32 %v1593_v58, %v766_v40 }
 0x234   :  { %v1375_v11 = vsub.f32 2.0, %v1367_v63 }
 0x235   :  { %v1595_v3 = vpop.eup %1594  ;;  %v1376_v15 = vsub.f32 2.0, %v1368_v4 }
 0x236   :  { %v1369_v12 = vmul.f32 %v1595_v3, %v769_v0  ;;  %v1383_v22 = vmul.f32 %v1591_v56, %v1375_v11 }
 0x237   :  { %v1384_v24 = vmul.f32 %v1593_v58, %v1376_v15 }
 0x238   :  { %v1377_v21 = vsub.f32 2.0, %v1369_v12 }
 0x23a   :  { %v1385_v30 = vmul.f32 %v1595_v3, %v1377_v21 }
 0x24b   :  { %v839_v55 = vpop.f32.mrf.mxu0 }
 0x24c   :  { %v1386_v57 = vmul.f32 %v1378_v52, %v839_v55 }
 0x24d   :  { %v1520_v59 = vpop.f32.mrf.mxu0 }
 0x24e   :  { %1394 = vst.msk [vmem:[#allocation8] sm:$0xff] %vm72_vm1, %v1386_v57 }
 0x24f   :  { %v912_v1 = vpop.f32.mrf.mxu1 }
 0x250   :  { %v1387_v5 = vmul.f32 %v1379_v61, %v912_v1  ;;  %v985_v6 = vpop.f32.mrf.mxu0 }
 0x251   :  { %v1388_v7 = vmul.f32 %v1380_v2, %v985_v6  ;;  %v1525_v8 = vpop.f32.mrf.mxu1 }
 0x252   :  { %1395 = vst.msk [vmem:[#allocation8 + $0x8] sm:$0xff] %vm72_vm1, %v1387_v5  ;;  %v1530_v9 = vpop.f32.mrf.mxu0 }
 0x253   :  { %1396 = vst.msk [vmem:[#allocation8 + $0x10] sm:$0xff] %vm72_vm1, %v1388_v7  ;;  %v1058_v13 = vpop.f32.mrf.mxu1 }
 0x254   :  { %v1389_v16 = vmul.f32 %v1381_v10, %v1058_v13  ;;  %v1131_v17 = vpop.f32.mrf.mxu0 }
 0x255   :  { %v1390_v18 = vmul.f32 %v1382_v14, %v1131_v17  ;;  %v1535_v19 = vpop.f32.mrf.mxu1 }
 0x256   :  { %1397 = vst.msk [vmem:[#allocation8 + $0x18] sm:$0xff] %vm72_vm1, %v1389_v16  ;;  %v1540_v20 = vpop.f32.mrf.mxu0 }
 0x257   :  { %1398 = vst.msk [vmem:[#allocation8 + $0x20] sm:$0xff] %vm72_vm1, %v1390_v18 }
 0x258   :  { %v1204_v23 = vpop.f32.mrf.mxu1 }
 0x259   :  { %v1391_v25 = vmul.f32 %v1383_v22, %v1204_v23  ;;  %v1277_v26 = vpop.f32.mrf.mxu0 }
 0x25a   :  { %v1392_v27 = vmul.f32 %v1384_v24, %v1277_v26  ;;  %v1545_v28 = vpop.f32.mrf.mxu1 }
 0x25b   :  { %1399 = vst.msk [vmem:[#allocation8 + $0x28] sm:$0xff] %vm72_vm1, %v1391_v25  ;;  %v1550_v29 = vpop.f32.mrf.mxu0 }
 0x25c   :  { %1400 = vst.msk [vmem:[#allocation8 + $0x30] sm:$0xff] %vm72_vm1, %v1392_v27  ;;  %v1350_v31 = vpop.f32.mrf.mxu1 }
 0x25d   :  { %v1393_v32 = vmul.f32 %v1385_v30, %v1350_v31 }
 0x25e   :  { %v1555_v33 = vpop.f32.mrf.mxu1 }
 0x25f   :  { %1401 = vst.msk [vmem:[#allocation8 + $0x38] sm:$0xff] %vm72_vm1, %v1393_v32 }
 0x260   :  { %1667 = shalt.err (!%p1664_p5)
}
 0x261   :  { %1413 = dma.vmem_to_hbm [thread:$0]  %s1408_s2, 1024, %s1833_s3, [#allocation4], %s1684_s17, %s1684_s17, %s1685_s18  }
 0x262   :  { %1680 = dma.done.wait [#allocation4], 1024  }
 0x263   :  { %1681 = vsyncadd [#allocation4], 4294966272 }
 0x264   :  { %1417 = vsyncpa [#allocation3], 1 }
 0x265   :  { %1418 = vsyncpa [#allocation6], 1 }
 0x266   :  { %1419 = vsyncpa [#allocation4], 1 }

</bundles_post_ra>
